<compile_context>
chip_gen: v5e
topology: v5e:2x2
jax: 0.10.0
libtpu: 0.0.40
codegen_flags: <defaults>
</compile_context>

<pallas_src>
import jax
import jax.numpy as jnp
from jax.experimental import pallas as pl
from jax.experimental.pallas import tpu as pltpu


def _mlp_kernel(x_ref, w1_ref, w2_ref, p_ref, o_ref):
    """One batch tile; BatchNorm affines are pre-folded into the weights."""
    x = x_ref[...]                        # (TB, 26)  batch on the sublane axis
    b1 = p_ref[0:1, :]                    # (1, 64)
    b2 = p_ref[1:2, 0:32]                 # (1, 32)
    w3 = p_ref[2:3, 0:32]                 # (1, 32)
    b3 = p_ref[3:4, 0:1]                  # (1, 1)

    # ---- Linear(26,64) + BN(64) (folded) + ReLU ----
    h = jnp.dot(x, w1_ref[...], preferred_element_type=jnp.float32) + b1
    h = jnp.maximum(h, 0.0)

    # ---- Linear(64,32) + BN(32) (folded) + ReLU ----  (Dropout = identity, eval)
    h = jnp.dot(h, w2_ref[...], preferred_element_type=jnp.float32) + b2
    h = jnp.maximum(h, 0.0)

    # ---- Linear(32,1) + BN(1) (folded) + Sigmoid ----
    # Width-1 output: VPU multiply + lane reduction (an MXU matmul would be ~1%
    # utilized); sigmoid uses the EUP approximate reciprocal (documented ~1e-3
    # absolute error vs exact jax.nn.sigmoid).
    z = jnp.sum(h * w3, axis=1, keepdims=True) + b3           # (TB, 1)
    o_ref[...] = pl.reciprocal(1.0 + jnp.exp(-z), approx=True)


def _round_up(a, m):
    return ((a + m - 1) // m) * m


def neural_network_forward(x, params, *, tile_b=8192):
    """Eval-mode forward.  x: (N, 26) float32 -> (N, 1) float32."""
    n, feat = x.shape
    assert feat == 26, x.shape
    f32 = jnp.float32
    if x.dtype != f32:
        x = x.astype(f32)

    # ---- Fold BatchNorm (running stats) into the preceding Linear ----
    def fold_bn(w, b, bn, eps=1e-5):
        gamma, beta, mean, var = bn
        s = gamma / jnp.sqrt(var + eps)
        t = beta - mean * s
        return w * s[None, :], b * s + t            # w: (in, out)

    w1f, b1f = fold_bn(params["w1"], params["b1"], params["bn1"])
    w2f, b2f = fold_bn(params["w2"], params["b2"], params["bn2"])
    w3f, b3f = fold_bn(params["w3"], params["b3"], params["bn3"])

    # Pack the small per-feature vectors into one (4, 64) slab -> a single DMA.
    pvec = jnp.zeros((4, 64), f32)
    pvec = pvec.at[0, :].set(b1f)                   # b1'  (64,)
    pvec = pvec.at[1, :32].set(b2f)                 # b2'  (32,)
    pvec = pvec.at[2, :32].set(w3f[:, 0])           # w3'  (32,)
    pvec = pvec.at[3, 0].set(b3f[0])                # b3'  scalar

    # ---- Batch tiling: natural row-major layout, no transpose / pad / cast ----
    n128 = _round_up(max(n, 1), 128)
    tb = min(_round_up(min(int(tile_b), 16384), 128), n128)
    # Keep >= ~8 grid steps on large batches so ("parallel",) load-balances
    # across TensorCores (v7x megacore), but never drop below 2048 rows/step
    # (which would re-expose the ~0.35us/step pipeline overhead).
    if n128 >= 8 * 2048:
        tb = min(tb, max(2048, _round_up(-(-n128 // 8), 128)))
    grid = pl.cdiv(n, tb)

    # Blocks + temporaries are lane-padded to 128 lanes (~4 KiB/row); set the
    # scoped-VMEM limit explicitly so v5e's 16 MiB default is not a constraint.
    vmem_limit = int(min(48 * 1024 * 1024, 8 * 1024 * 1024 + 4 * 1024 * tb))

    flops = 2 * n * (26 * 64 + 64 * 32 + 32)
    bytes_accessed = 4 * n * (26 + 1) + 4 * (26 * 64 + 64 * 32 + 4 * 64)

    return pl.pallas_call(
        _mlp_kernel,
        out_shape=jax.ShapeDtypeStruct((n, 1), f32),
        grid=(grid,),
        in_specs=[
            pl.BlockSpec((tb, 26), lambda i: (i, 0)),    # x tile (pipelined)
            pl.BlockSpec((26, 64), lambda i: (0, 0)),    # BN-folded W1 (resident)
            pl.BlockSpec((64, 32), lambda i: (0, 0)),    # BN-folded W2 (resident)
            pl.BlockSpec((4, 64), lambda i: (0, 0)),     # packed b1'/b2'/w3'/b3'
        ],
        out_specs=pl.BlockSpec((tb, 1), lambda i: (i, 0)),
        compiler_params=pltpu.CompilerParams(
            dimension_semantics=("parallel",),
            vmem_limit_bytes=vmem_limit),
        cost_estimate=pl.CostEstimate(
            flops=flops, transcendentals=n, bytes_accessed=bytes_accessed),
    )(x, w1f, w2f, pvec)


def init_params(key):
    """Deterministic params matching the PyTorch module's shapes.

    Linear weights are stored (in_features, out_features) so the math is x @ W
    (PyTorch stores (out, in) and computes x @ W.T — equivalent).  BN uses
    PyTorch-default running stats with a randomly drawn gamma so the folded
    affine is non-trivial.
    """
    keys = jax.random.split(key, 9)

    def linear(kw, kb, fan_in, fan_out):
        bound = 1.0 / jnp.sqrt(fan_in)
        w = jax.random.uniform(kw, (fan_in, fan_out), jnp.float32, -bound, bound)
        b = jax.random.uniform(kb, (fan_out,), jnp.float32, -bound, bound)
        return w, b

    w1, b1 = linear(keys[0], keys[1], 26, 64)
    w2, b2 = linear(keys[2], keys[3], 64, 32)
    w3, b3 = linear(keys[4], keys[5], 32, 1)

    def bn(kg, dim):
        gamma = 1.0 + 0.1 * jax.random.normal(kg, (dim,), jnp.float32)
        beta = jnp.zeros((dim,), jnp.float32)
        running_mean = jnp.zeros((dim,), jnp.float32)
        running_var = jnp.ones((dim,), jnp.float32)
        return (gamma, beta, running_mean, running_var)

    return {
        "w1": w1, "b1": b1, "bn1": bn(keys[6], 64),
        "w2": w2, "b2": b2, "bn2": bn(keys[7], 32),
        "w3": w3, "b3": b3, "bn3": bn(keys[8], 1),
    }


def _reference_forward(x, params):
    """Pure-JAX reference (eval-mode module semantics) for correctness check."""
    def bn(h, p, eps=1e-5):
        gamma, beta, mean, var = p
        return gamma * (h - mean) / jnp.sqrt(var + eps) + beta

    h = x @ params["w1"] + params["b1"]
    h = jnp.maximum(bn(h, params["bn1"]), 0.0)
    h = h @ params["w2"] + params["b2"]
    h = jnp.maximum(bn(h, params["bn2"]), 0.0)
    h = h @ params["w3"] + params["b3"]
    return jax.nn.sigmoid(bn(h, params["bn3"]))


# TODO(synk): training-mode BatchNorm (batch statistics) and Dropout RNG are not
# implemented; this kernel reproduces the module's eval-mode forward only.

if __name__ == "__main__":
    key = jax.random.PRNGKey(0)
    k_params, k_x = jax.random.split(key)
    params = init_params(k_params)

    # Small single-tile batch.
    x = jax.random.normal(k_x, (8, 26), jnp.float32)
    out = jax.block_until_ready(neural_network_forward(x, params))
    ref = _reference_forward(x, params)
    assert out.shape == (8, 1), out.shape
    # Tolerance covers the EUP approximate-reciprocal sigmoid and default-precision matmuls.
    assert jnp.allclose(out, ref, atol=5e-3, rtol=0), "mismatch vs reference"

    # Ragged batch exercising a multi-step grid and the partial trailing block.
    x2 = jax.random.normal(jax.random.PRNGKey(1), (300, 26), jnp.float32)
    out2 = jax.block_until_ready(neural_network_forward(x2, params, tile_b=128))
    ref2 = _reference_forward(x2, params)
    assert out2.shape == (300, 1), out2.shape
    assert jnp.allclose(out2, ref2, atol=5e-3, rtol=0), "mismatch vs reference (tiled)"

    print("KERNEL_OK")
</pallas_src>

<mosaic_0001>
module attributes {stable_mosaic.version = 11 : i64} {
  func.func @_mlp_kernel(%arg0: i32, %arg1: memref<128x26xf32, #tpu.memory_space<vmem>>, %arg2: memref<26x64xf32, #tpu.memory_space<vmem>>, %arg3: memref<64x32xf32, #tpu.memory_space<vmem>>, %arg4: memref<4x64xf32, #tpu.memory_space<vmem>>, %arg5: memref<128x1xf32, #tpu.memory_space<vmem>>) attributes {dimension_semantics = [#tpu.dimension_semantics<parallel>], iteration_bounds = array<i64: 1>, scalar_prefetch = 0 : i64, scratch_operands = 0 : i64, tpu.core_type = #tpu.core_type<tc>, window_params = [{transform_indices = @transform_0, window_bounds = array<i64: 128, 26>}, {pipeline_mode = #tpu.pipeline_mode<synchronous>, transform_indices = @transform_1, window_bounds = array<i64: 26, 64>}, {pipeline_mode = #tpu.pipeline_mode<synchronous>, transform_indices = @transform_2, window_bounds = array<i64: 64, 32>}, {pipeline_mode = #tpu.pipeline_mode<synchronous>, transform_indices = @transform_3, window_bounds = array<i64: 4, 64>}, {transform_indices = @transform_4, window_bounds = array<i64: 128, 1>}]} {
    %c0 = arith.constant 0 : index
    %c0_0 = arith.constant 0 : index
    %0 = vector.load %arg1[%c0, %c0_0] : memref<128x26xf32, #tpu.memory_space<vmem>>, vector<128x26xf32>
    %c0_1 = arith.constant 0 : index
    %c0_2 = arith.constant 0 : index
    %1 = vector.load %arg4[%c0_1, %c0_2] : memref<4x64xf32, #tpu.memory_space<vmem>>, vector<1x64xf32>
    %c1 = arith.constant 1 : index
    %c0_3 = arith.constant 0 : index
    %2 = vector.load %arg4[%c1, %c0_3] : memref<4x64xf32, #tpu.memory_space<vmem>>, vector<1x32xf32>
    %c2 = arith.constant 2 : index
    %c0_4 = arith.constant 0 : index
    %3 = vector.load %arg4[%c2, %c0_4] : memref<4x64xf32, #tpu.memory_space<vmem>>, vector<1x32xf32>
    %c3 = arith.constant 3 : index
    %c0_5 = arith.constant 0 : index
    %4 = vector.load %arg4[%c3, %c0_5] : memref<4x64xf32, #tpu.memory_space<vmem>>, vector<1x1xf32>
    %c0_6 = arith.constant 0 : index
    %c0_7 = arith.constant 0 : index
    %5 = vector.load %arg2[%c0_6, %c0_7] : memref<26x64xf32, #tpu.memory_space<vmem>>, vector<26x64xf32>
    %cst = arith.constant dense<0.000000e+00> : vector<128x64xf32>
    %6 = tpu.matmul %0, %5, %cst {dimension_numbers = #tpu.dot_dimension_numbers<[1], [0], [0], [1], [0, 0, 1, 1], [], []>} : vector<128x26xf32>, vector<26x64xf32>, vector<128x64xf32> -> vector<128x64xf32>
    %7 = vector.broadcast %1 : vector<1x64xf32> to vector<128x64xf32>
    %8 = arith.addf %6, %7 : vector<128x64xf32>
    %cst_8 = arith.constant 0.000000e+00 : f32
    %9 = vector.broadcast %cst_8 : f32 to vector<128x64xf32>
    %10 = arith.maximumf %8, %9 : vector<128x64xf32>
    %c0_9 = arith.constant 0 : index
    %c0_10 = arith.constant 0 : index
    %11 = vector.load %arg3[%c0_9, %c0_10] : memref<64x32xf32, #tpu.memory_space<vmem>>, vector<64x32xf32>
    %cst_11 = arith.constant dense<0.000000e+00> : vector<128x32xf32>
    %12 = tpu.matmul %10, %11, %cst_11 {dimension_numbers = #tpu.dot_dimension_numbers<[1], [0], [0], [1], [0, 0, 1, 1], [], []>} : vector<128x64xf32>, vector<64x32xf32>, vector<128x32xf32> -> vector<128x32xf32>
    %13 = vector.broadcast %2 : vector<1x32xf32> to vector<128x32xf32>
    %14 = arith.addf %12, %13 : vector<128x32xf32>
    %cst_12 = arith.constant 0.000000e+00 : f32
    %15 = vector.broadcast %cst_12 : f32 to vector<128x32xf32>
    %16 = arith.maximumf %14, %15 : vector<128x32xf32>
    %17 = vector.broadcast %3 : vector<1x32xf32> to vector<128x32xf32>
    %18 = arith.mulf %16, %17 : vector<128x32xf32>
    %cst_13 = arith.constant dense<0.000000e+00> : vector<128xf32>
    %19 = vector.multi_reduction <add>, %18, %cst_13 [1] : vector<128x32xf32> to vector<128xf32>
    %20 = vector.shape_cast %19 : vector<128xf32> to vector<128x1xf32>
    %21 = vector.broadcast %4 : vector<1x1xf32> to vector<128x1xf32>
    %22 = arith.addf %20, %21 : vector<128x1xf32>
    %cst_14 = arith.constant 0.000000e+00 : f32
    %23 = vector.broadcast %cst_14 : f32 to vector<128x1xf32>
    %24 = arith.subf %23, %22 : vector<128x1xf32>
    %25 = math.exp %24 : vector<128x1xf32>
    %cst_15 = arith.constant 1.000000e+00 : f32
    %26 = vector.broadcast %cst_15 : f32 to vector<128x1xf32>
    %27 = arith.addf %26, %25 : vector<128x1xf32>
    %28 = tpu.reciprocal %27 {approx = true} : vector<128x1xf32> -> vector<128x1xf32>
    %c0_16 = arith.constant 0 : index
    %c0_17 = arith.constant 0 : index
    %29 = vector.load %arg5[%c0_16, %c0_17] : memref<128x1xf32, #tpu.memory_space<vmem>>, vector<128x1xf32>
    tpu.vector_store %arg5[%c0_16, %c0_17], %28 {strides = array<i32>} : memref<128x1xf32, #tpu.memory_space<vmem>>, vector<128x1xf32>,
    return
  }
  func.func @transform_0(%arg0: i32) -> (i32, i32) {
    %c0_i32 = arith.constant 0 : i32
    %c0_i32_0 = arith.constant 0 : i32
    return %arg0, %c0_i32 : i32, i32
  }
  func.func @transform_1(%arg0: i32) -> (i32, i32) {
    %c0_i32 = arith.constant 0 : i32
    %c0_i32_0 = arith.constant 0 : i32
    %c0_i32_1 = arith.constant 0 : i32
    return %c0_i32, %c0_i32_0 : i32, i32
  }
  func.func @transform_2(%arg0: i32) -> (i32, i32) {
    %c0_i32 = arith.constant 0 : i32
    %c0_i32_0 = arith.constant 0 : i32
    %c0_i32_1 = arith.constant 0 : i32
    return %c0_i32, %c0_i32_0 : i32, i32
  }
  func.func @transform_3(%arg0: i32) -> (i32, i32) {
    %c0_i32 = arith.constant 0 : i32
    %c0_i32_0 = arith.constant 0 : i32
    %c0_i32_1 = arith.constant 0 : i32
    return %c0_i32, %c0_i32_0 : i32, i32
  }
  func.func @transform_4(%arg0: i32) -> (i32, i32) {
    %c0_i32 = arith.constant 0 : i32
    %c0_i32_0 = arith.constant 0 : i32
    return %arg0, %c0_i32 : i32, i32
  }
}

</mosaic_0001>

<bundles_post_ra>
// kernel: tpu_custom_call.1
= control target key start
LH: loop header
LB: loop body
LE: loop exit
PB: predicated region body
PF: predicated region fallthrough
CT: control target
= control target key end

     0   :  { %vm91_vm0 = vcmask 1041408   ;;  %vm42_vm1 = vcmask 211968   ;;  %vm185_vm2 = vcmask 523264   ;;  %vm332_vm3 = vcmask 261120   ;;  %s893_s0 = inlined_call_operand.vmem [shape: f32[8,26], index: 0, kind: input, shape index: {}]   ;;  %s894_s1 = inlined_call_operand.vmem [shape: f32[26,64], index: 1, kind: input, shape index: {}]   ;;  %s895_s2 = inlined_call_operand.vmem [shape: f32[64,32], index: 2, kind: input, shape index: {}]   ;;  %s896_s3 = inlined_call_operand.vmem [shape: f32[4,64], index: 3, kind: input, shape index: {}]   ;;  %s897_s4 = inlined_call_operand.vmem [shape: f32[8,1], index: 4, kind: output, shape index: {}]  }
   0x1   :  { %v40_v0 = vld [vmem:[%s894_s1 + $0x18] sm:$0x3]  ;;  %v39_v1 = vld [vmem:[%s894_s1 + $0x10] sm:$0xff]  ;;  %v38_v2 = vld [vmem:[%s894_s1 + $0x8] sm:$0xff]  ;;  %vm478_vm4 = vcmask 7168  }
   0x2   :  { %536 = vmatpush.msk.msra.mxu0 %vm91_vm0, %v40_v0  ;;  %569 = vmatpush.msk.msra.mxu3 %vm91_vm0, %v40_v0  ;;  %v37_v3 = vld [vmem:[%s894_s1] sm:$0xff]  ;;  %v18_v5 = vld [vmem:[%s893_s0 + $0x8] sm:$0xff]  ;;  %v19_v6 = vld [vmem:[%s893_s0 + $0x10] sm:$0xff] }
   0x3   :  { %v17_v4 = vld [vmem:[%s893_s0] sm:$0xff]  ;;  %v20_v7 = vld [vmem:[%s893_s0 + $0x18] sm:$0xff]  ;;  %v26_v9 = vld [vmem:[%s893_s0 + $0x48] sm:$0xff] }
   0x4   :  { %108 = vmatpush.msra.mxu0 %v39_v1  ;;  %570 = vmatpush.msra.mxu3 %v39_v1  ;;  %v21_v8 = vld [vmem:[%s893_s0 + $0x20] sm:$0xff]  ;;  %v22_v10 = vld [vmem:[%s893_s0 + $0x28] sm:$0xff]  ;;  %v27_v11 = vld [vmem:[%s893_s0 + $0x50] sm:$0xff] }
   0x5   :  { %v23_v12 = vld [vmem:[%s893_s0 + $0x30] sm:$0xff]  ;;  %v28_v13 = vld [vmem:[%s893_s0 + $0x58] sm:$0xff]  ;;  %v181_v16 = vld [vmem:[%s895_s2 + $0x28] sm:$0xff] }
   0x6   :  { %109 = vmatpush.msra.mxu0 %v38_v2  ;;  %571 = vmatpush.msra.mxu3 %v38_v2  ;;  %v183_v14 = vld [vmem:[%s895_s2 + $0x38] sm:$0xff]  ;;  %v182_v15 = vld [vmem:[%s895_s2 + $0x30] sm:$0xff]  ;;  %v180_v18 = vld [vmem:[%s895_s2 + $0x20] sm:$0xff] }
   0x7   :  { %242 = vmatpush.msra.mxu1 %v183_v14  ;;  %573 = vmatpush.msra.mxu2 %v183_v14  ;;  %v24_v17 = vld [vmem:[%s893_s0 + $0x38] sm:$0xff]  ;;  %v29_v19 = vld [vmem:[%s893_s0 + $0x60] sm:$0xff]  ;;  %v30_v22 = vld [vmem:[%s893_s0 + $0x68] sm:$0xff] }
   0x8   :  { %110 = vmatpush.msra.mxu0 %v37_v3  ;;  %572 = vmatpush.msra.mxu3 %v37_v3  ;;  %v179_v20 = vld [vmem:[%s895_s2 + $0x18] sm:$0xff]  ;;  %v25_v21 = vld [vmem:[%s893_s0 + $0x40] sm:$0xff]  ;;  %v31_v23 = vld [vmem:[%s893_s0 + $0x70] sm:$0xff] }
   0x9   :  { %537 = vmatmul.msk.f32.vlgmr.msra.gmra.mxu0 %vm42_vm1, %v17_v4  ;;  %546 = vmatmul.msk.f32.vlgmr.msra.gmra.mxu3 %vm42_vm1, %v26_v9  ;;  %v32_v24 = vld [vmem:[%s893_s0 + $0x78] sm:$0xff]  ;;  %v178_v25 = vld [vmem:[%s895_s2 + $0x10] sm:$0xff]  ;;  %v177_v26 = vld [vmem:[%s895_s2 + $0x8] sm:$0xff] }
   0xa   :  { %243 = vmatpush.msra.mxu1 %v182_v15  ;;  %574 = vmatpush.msra.mxu2 %v182_v15  ;;  %v176_v27 = vld [vmem:[%s895_s2] sm:$0xff] }
   0xb   :  { %v777_v28 = vld [vmem:[%s896_s3] ss:$0 sm:$0xff] }
   0xc   :  { %244 = vmatpush.msra.mxu1 %v181_v16  ;;  %575 = vmatpush.msra.mxu2 %v181_v16  ;;  %v820_v16 = vld [vmem:[%s896_s3 + $0x2] ss:$0 sm:$0xff] }
   0xe   :  { %245 = vmatpush.msra.mxu1 %v180_v18  ;;  %576 = vmatpush.msra.mxu2 %v180_v18 }
  0x10   :  { %246 = vmatpush.msra.mxu1 %v179_v20  ;;  %577 = vmatpush.msra.mxu2 %v179_v20 }
  0x11   :  { %538 = vmatmul.msk.f32.gmra.mxu0 %vm42_vm1, %v18_v5  ;;  %547 = vmatmul.msk.f32.gmra.mxu3 %vm42_vm1, %v27_v11 }
  0x12   :  { %247 = vmatpush.msra.mxu1 %v178_v25  ;;  %578 = vmatpush.msra.mxu2 %v178_v25 }
  0x14   :  { %248 = vmatpush.msra.mxu1 %v177_v26  ;;  %579 = vmatpush.msra.mxu2 %v177_v26 }
  0x16   :  { %249 = vmatpush.msra.mxu1 %v176_v27  ;;  %580 = vmatpush.msra.mxu2 %v176_v27 }
  0x19   :  { %539 = vmatmul.msk.f32.gmra.mxu0 %vm42_vm1, %v19_v6  ;;  %548 = vmatmul.msk.f32.gmra.mxu3 %vm42_vm1, %v28_v13  ;;  %v814_v13 = vld [vmem:[%s896_s3 + $0x1] ss:$0 sm:$0xff] }
  0x21   :  { %540 = vmatmul.msk.f32.gmra.mxu0 %vm42_vm1, %v20_v7  ;;  %549 = vmatmul.msk.f32.gmra.mxu3 %vm42_vm1, %v29_v19 }
  0x29   :  { %541 = vmatmul.msk.f32.gmra.mxu0 %vm42_vm1, %v21_v8  ;;  %550 = vmatmul.msk.f32.gmra.mxu3 %vm42_vm1, %v30_v22 }
  0x31   :  { %542 = vmatmul.msk.f32.gmra.mxu0 %vm42_vm1, %v22_v10  ;;  %551 = vmatmul.msk.f32.gmra.mxu3 %vm42_vm1, %v31_v23 }
  0x39   :  { %543 = vmatmul.msk.f32.gmra.mxu0 %vm42_vm1, %v23_v12  ;;  %552 = vmatmul.msk.f32.gmra.mxu3 %vm42_vm1, %v32_v24 }
  0x41   :  { %544 = vmatmul.msk.f32.gmra.mxu0 %vm42_vm1, %v24_v17 }
  0x49   :  { %545 = vmatmul.msk.f32.gmra.mxu0 %vm42_vm1, %v25_v21 }
  0x86   :  { %v112_v29 = vpop.f32.mrf.mxu0 }
  0x87   :  { %v113_v30 = vadd.f32 %v777_v28, %v112_v29 }
  0x89   :  { %v160_v31 = vmax.f32 %v113_v30, 0.0 }
  0x8b   :  { %553 = vmatmul.msk.f32.vlgmr.msra.gmra.mxu1 %vm185_vm2, %v160_v31 }
  0x8c   :  { %v139_v50 = vpop.f32.mrf.mxu3 }
  0x8d   :  { %v140_v58 = vadd.f32 %v777_v28, %v139_v50 }
  0x8e   :  { %v115_v32 = vpop.f32.mrf.mxu0 }
  0x8f   :  { %v116_v33 = vadd.f32 %v777_v28, %v115_v32  ;;  %v169_v59 = vmax.f32 %v140_v58, 0.0 }
  0x91   :  { %v161_v34 = vmax.f32 %v116_v33, 0.0 }
  0x93   :  { %554 = vmatmul.msk.f32.gmra.mxu1 %vm185_vm2, %v161_v34 }
  0x94   :  { %v142_v55 = vpop.f32.mrf.mxu3 }
  0x95   :  { %v143_v61 = vadd.f32 %v777_v28, %v142_v55 }
  0x96   :  { %v118_v35 = vpop.f32.mrf.mxu0 }
  0x97   :  { %v119_v36 = vadd.f32 %v777_v28, %v118_v35  ;;  %v170_v62 = vmax.f32 %v143_v61, 0.0 }
  0x99   :  { %v162_v37 = vmax.f32 %v119_v36, 0.0 }
  0x9b   :  { %555 = vmatmul.msk.f32.gmra.mxu1 %vm185_vm2, %v162_v37 }
  0x9c   :  { %v145_v60 = vpop.f32.mrf.mxu3 }
  0x9d   :  { %v146_v0 = vadd.f32 %v777_v28, %v145_v60 }
  0x9e   :  { %v121_v38 = vpop.f32.mrf.mxu0 }
  0x9f   :  { %v122_v39 = vadd.f32 %v777_v28, %v121_v38  ;;  %v171_v1 = vmax.f32 %v146_v0, 0.0 }
  0xa1   :  { %v163_v40 = vmax.f32 %v122_v39, 0.0 }
  0xa3   :  { %556 = vmatmul.msk.f32.gmra.mxu1 %vm185_vm2, %v163_v40 }
  0xa4   :  { %v148_v63 = vpop.f32.mrf.mxu3 }
  0xa5   :  { %v149_v2 = vadd.f32 %v777_v28, %v148_v63 }
  0xa6   :  { %v124_v41 = vpop.f32.mrf.mxu0 }
  0xa7   :  { %v125_v42 = vadd.f32 %v777_v28, %v124_v41  ;;  %v172_v4 = vmax.f32 %v149_v2, 0.0 }
  0xa9   :  { %v164_v43 = vmax.f32 %v125_v42, 0.0 }
  0xab   :  { %557 = vmatmul.msk.f32.gmra.mxu1 %vm185_vm2, %v164_v43 }
  0xac   :  { %v151_v3 = vpop.f32.mrf.mxu3 }
  0xad   :  { %v152_v5 = vadd.f32 %v777_v28, %v151_v3 }
  0xae   :  { %v127_v44 = vpop.f32.mrf.mxu0 }
  0xaf   :  { %v128_v45 = vadd.f32 %v777_v28, %v127_v44  ;;  %v173_v7 = vmax.f32 %v152_v5, 0.0 }
  0xb1   :  { %v165_v46 = vmax.f32 %v128_v45, 0.0 }
  0xb3   :  { %558 = vmatmul.msk.f32.gmra.mxu1 %vm185_vm2, %v165_v46 }
  0xb4   :  { %v154_v6 = vpop.f32.mrf.mxu3 }
  0xb5   :  { %v155_v8 = vadd.f32 %v777_v28, %v154_v6 }
  0xb6   :  { %v130_v47 = vpop.f32.mrf.mxu0 }
  0xb7   :  { %v131_v48 = vadd.f32 %v777_v28, %v130_v47  ;;  %v174_v9 = vmax.f32 %v155_v8, 0.0 }
  0xb9   :  { %v166_v49 = vmax.f32 %v131_v48, 0.0 }
  0xbb   :  { %559 = vmatmul.msk.f32.gmra.mxu1 %vm185_vm2, %v166_v49 }
  0xbc   :  { %v157_v10 = vpop.f32.mrf.mxu3 }
  0xbd   :  { %v158_v11 = vadd.f32 %v777_v28, %v157_v10 }
  0xbe   :  { %v133_v51 = vpop.f32.mrf.mxu0 }
  0xbf   :  { %v134_v52 = vadd.f32 %v777_v28, %v133_v51  ;;  %v175_v12 = vmax.f32 %v158_v11, 0.0 }
  0xc1   :  { %v167_v53 = vmax.f32 %v134_v52, 0.0 }
  0xc3   :  { %560 = vmatmul.msk.f32.gmra.mxu1 %vm185_vm2, %v167_v53 }
  0xc6   :  { %v136_v54 = vpop.f32.mrf.mxu0 }
  0xc7   :  { %v137_v56 = vadd.f32 %v777_v28, %v136_v54 }
  0xc9   :  { %v168_v57 = vmax.f32 %v137_v56, 0.0 }
  0xcb   :  { %561 = vmatmul.msk.f32.vlgmr.msra.gmra.mxu2 %vm185_vm2, %v168_v57 }
  0xd3   :  { %562 = vmatmul.msk.f32.gmra.mxu2 %vm185_vm2, %v169_v59 }
  0xdb   :  { %563 = vmatmul.msk.f32.gmra.mxu2 %vm185_vm2, %v170_v62 }
  0xe3   :  { %564 = vmatmul.msk.f32.gmra.mxu2 %vm185_vm2, %v171_v1 }
  0xeb   :  { %565 = vmatmul.msk.f32.gmra.mxu2 %vm185_vm2, %v172_v4 }
  0xf3   :  { %566 = vmatmul.msk.f32.gmra.mxu2 %vm185_vm2, %v173_v7 }
  0xfb   :  { %567 = vmatmul.msk.f32.gmra.mxu2 %vm185_vm2, %v174_v9 }
 0x103   :  { %568 = vmatmul.msk.f32.gmra.mxu2 %vm185_vm2, %v175_v12 }
 0x108   :  { %v251_v14 = vpop.f32.mrf.mxu1 }
 0x109   :  { %v252_v15 = vadd.f32 %v814_v13, %v251_v14 }
 0x10b   :  { %v299_v17 = vmax.f32 %v252_v15, 0.0 }
 0x10d   :  { %v316_v18 = vmul.f32 %v820_v16, %v299_v17 }
 0x10f   :  { %v333_v19 = vsel %vm332_vm3, %v316_v18, 0.0 }
 0x110   :  { %v254_v20 = vpop.f32.mrf.mxu1  ;;  %334 = vadd.xlane.f32.xlu0 %v333_v19 }
 0x111   :  { %v255_v21 = vadd.f32 %v814_v13, %v254_v20 }
 0x113   :  { %v300_v22 = vmax.f32 %v255_v21, 0.0 }
 0x115   :  { %v317_v23 = vmul.f32 %v820_v16, %v300_v22 }
 0x117   :  { %v336_v24 = vsel %vm332_vm3, %v317_v23, 0.0 }
 0x118   :  { %v257_v25 = vpop.f32.mrf.mxu1  ;;  %337 = vadd.xlane.f32.xlu0 %v336_v24 }
 0x119   :  { %v258_v26 = vadd.f32 %v814_v13, %v257_v25  ;;  %v867_v25 = vld [vmem:[%s896_s3 + $0x3] ss:$0 sm:$0xff] }
 0x11b   :  { %v301_v27 = vmax.f32 %v258_v26, 0.0 }
 0x11d   :  { %v318_v28 = vmul.f32 %v820_v16, %v301_v27 }
 0x11f   :  { %v339_v29 = vsel %vm332_vm3, %v318_v28, 0.0 }
 0x120   :  { %v260_v30 = vpop.f32.mrf.mxu1  ;;  %340 = vadd.xlane.f32.xlu1 %v339_v29 }
 0x121   :  { %v261_v31 = vadd.f32 %v814_v13, %v260_v30 }
 0x123   :  { %v302_v32 = vmax.f32 %v261_v31, 0.0 }
 0x125   :  { %v319_v33 = vmul.f32 %v820_v16, %v302_v32 }
 0x127   :  { %v342_v34 = vsel %vm332_vm3, %v319_v33, 0.0 }
 0x128   :  { %v263_v35 = vpop.f32.mrf.mxu1  ;;  %343 = vadd.xlane.f32.xlu1 %v342_v34 }
 0x129   :  { %v264_v36 = vadd.f32 %v814_v13, %v263_v35 }
 0x12b   :  { %v303_v37 = vmax.f32 %v264_v36, 0.0 }
 0x12d   :  { %v320_v38 = vmul.f32 %v820_v16, %v303_v37 }
 0x12f   :  { %v345_v39 = vsel %vm332_vm3, %v320_v38, 0.0 }
 0x130   :  { %v266_v40 = vpop.f32.mrf.mxu1  ;;  %346 = vadd.xlane.f32.xlu2 %v345_v39 }
 0x131   :  { %v267_v41 = vadd.f32 %v814_v13, %v266_v40 }
 0x133   :  { %v304_v42 = vmax.f32 %v267_v41, 0.0 }
 0x135   :  { %v321_v43 = vmul.f32 %v820_v16, %v304_v42 }
 0x137   :  { %v348_v44 = vsel %vm332_vm3, %v321_v43, 0.0 }
 0x138   :  { %v269_v45 = vpop.f32.mrf.mxu1  ;;  %349 = vadd.xlane.f32.xlu2 %v348_v44 }
 0x139   :  { %v270_v46 = vadd.f32 %v814_v13, %v269_v45 }
 0x13b   :  { %v305_v47 = vmax.f32 %v270_v46, 0.0 }
 0x13d   :  { %v322_v48 = vmul.f32 %v820_v16, %v305_v47 }
 0x13f   :  { %v351_v49 = vsel %vm332_vm3, %v322_v48, 0.0 }
 0x140   :  { %v272_v50 = vpop.f32.mrf.mxu1  ;;  %352 = vadd.xlane.f32.xlu0 %v351_v49 }
 0x141   :  { %v273_v51 = vadd.f32 %v814_v13, %v272_v50 }
 0x143   :  { %v306_v52 = vmax.f32 %v273_v51, 0.0 }
 0x145   :  { %v323_v53 = vmul.f32 %v820_v16, %v306_v52 }
 0x147   :  { %v354_v54 = vsel %vm332_vm3, %v323_v53, 0.0 }
 0x148   :  { %355 = vadd.xlane.f32.xlu1 %v354_v54 }
 0x14e   :  { %v275_v55 = vpop.f32.mrf.mxu2 }
 0x14f   :  { %v276_v56 = vadd.f32 %v814_v13, %v275_v55 }
 0x151   :  { %v307_v57 = vmax.f32 %v276_v56, 0.0 }
 0x153   :  { %v324_v58 = vmul.f32 %v820_v16, %v307_v57 }
 0x155   :  { %v357_v59 = vsel %vm332_vm3, %v324_v58, 0.0 }
 0x156   :  { %v278_v60 = vpop.f32.mrf.mxu2  ;;  %358 = vadd.xlane.f32.xlu2 %v357_v59 }
 0x157   :  { %v279_v61 = vadd.f32 %v814_v13, %v278_v60 }
 0x159   :  { %v308_v62 = vmax.f32 %v279_v61, 0.0 }
 0x15b   :  { %v325_v63 = vmul.f32 %v820_v16, %v308_v62 }
 0x15d   :  { %v360_v0 = vsel %vm332_vm3, %v325_v63, 0.0 }
 0x15e   :  { %v281_v1 = vpop.f32.mrf.mxu2  ;;  %361 = vadd.xlane.f32.xlu0 %v360_v0 }
 0x15f   :  { %v282_v2 = vadd.f32 %v814_v13, %v281_v1 }
 0x161   :  { %v309_v3 = vmax.f32 %v282_v2, 0.0 }
 0x163   :  { %v326_v4 = vmul.f32 %v820_v16, %v309_v3 }
 0x165   :  { %v363_v5 = vsel %vm332_vm3, %v326_v4, 0.0 }
 0x166   :  { %v284_v6 = vpop.f32.mrf.mxu2  ;;  %364 = vadd.xlane.f32.xlu1 %v363_v5 }
 0x167   :  { %v285_v7 = vadd.f32 %v814_v13, %v284_v6 }
 0x169   :  { %v310_v8 = vmax.f32 %v285_v7, 0.0 }
 0x16b   :  { %v327_v9 = vmul.f32 %v820_v16, %v310_v8 }
 0x16d   :  { %v366_v10 = vsel %vm332_vm3, %v327_v9, 0.0 }
 0x16e   :  { %v287_v11 = vpop.f32.mrf.mxu2  ;;  %367 = vadd.xlane.f32.xlu2 %v366_v10 }
 0x16f   :  { %v288_v12 = vadd.f32 %v814_v13, %v287_v11 }
 0x171   :  { %v311_v14 = vmax.f32 %v288_v12, 0.0 }
 0x173   :  { %v328_v15 = vmul.f32 %v820_v16, %v311_v14 }
 0x175   :  { %v369_v17 = vsel %vm332_vm3, %v328_v15, 0.0 }
 0x176   :  { %v290_v18 = vpop.f32.mrf.mxu2  ;;  %370 = vadd.xlane.f32.xlu0 %v369_v17 }
 0x177   :  { %v291_v19 = vadd.f32 %v814_v13, %v290_v18 }
 0x179   :  { %v312_v20 = vmax.f32 %v291_v19, 0.0 }
 0x17b   :  { %v329_v21 = vmul.f32 %v820_v16, %v312_v20 }
 0x17d   :  { %v372_v22 = vsel %vm332_vm3, %v329_v21, 0.0 }
 0x17e   :  { %v293_v23 = vpop.f32.mrf.mxu2  ;;  %373 = vadd.xlane.f32.xlu1 %v372_v22 }
 0x17f   :  { %v294_v24 = vadd.f32 %v814_v13, %v293_v23 }
 0x181   :  { %v313_v26 = vmax.f32 %v294_v24, 0.0 }
 0x183   :  { %v335_v27 = vpop.xlane.xlu0 %334  ;;  %v330_v28 = vmul.f32 %v820_v16, %v313_v26 }
 0x184   :  { %v382_v29 = vadd.f32 %v867_v25, %v335_v27 }
 0x185   :  { %v375_v30 = vsel %vm332_vm3, %v330_v28, 0.0 }
 0x186   :  { %v398_v31 = vsub.f32 0.0, %v382_v29  ;;  %v296_v32 = vpop.f32.mrf.mxu2  ;;  %376 = vadd.xlane.f32.xlu2 %v375_v30 }
 0x187   :  { %v297_v33 = vadd.f32 %v814_v13, %v296_v32 }
 0x188   :  { %v414_v34 = vmul.f32 1.442695, %v398_v31 }
 0x189   :  { %v314_v35 = vmax.f32 %v297_v33, 0.0 }
 0x18a   :  { %585 = vpow2.f32 %v414_v34 }
 0x18b   :  { %v338_v36 = vpop.xlane.xlu0 %337  ;;  %v331_v37 = vmul.f32 %v820_v16, %v314_v35 }
 0x18c   :  { %v383_v38 = vadd.f32 %v867_v25, %v338_v36 }
 0x18d   :  { %v378_v39 = vsel %vm332_vm3, %v331_v37, 0.0 }
 0x18e   :  { %v399_v40 = vsub.f32 0.0, %v383_v38  ;;  %379 = vadd.xlane.f32.xlu0 %v378_v39 }
 0x190   :  { %v586_v41 = vpop.eup %585  ;;  %v416_v42 = vmul.f32 1.442695, %v399_v40 }
 0x191   :  { %v446_v43 = vadd.f32 1.0, %v586_v41 }
 0x192   :  { %587 = vpow2.f32 %v416_v42 }
 0x193   :  { %589 = vrcp.f32 %v446_v43  ;;  %v341_v44 = vpop.xlane.xlu1 %340 }
 0x194   :  { %v384_v13 = vadd.f32 %v867_v25, %v341_v44 }
 0x196   :  { %v400_v45 = vsub.f32 0.0, %v384_v13 }
 0x198   :  { %v588_v46 = vpop.eup %587  ;;  %v418_v47 = vmul.f32 1.442695, %v400_v45 }
 0x199   :  { %v590_v48 = vpop.eup %589  ;;  %v447_v16 = vadd.f32 1.0, %v588_v46 }
 0x19a   :  { %479 = vst.msk [vmem:[#allocation2] sm:$0xff] %vm478_vm4, %v590_v48  ;;  %591 = vpow2.f32 %v418_v47 }
 0x19b   :  { %593 = vrcp.f32 %v447_v16  ;;  %v344_v49 = vpop.xlane.xlu1 %343 }
 0x19c   :  { %v385_v50 = vadd.f32 %v867_v25, %v344_v49 }
 0x19e   :  { %v401_v51 = vsub.f32 0.0, %v385_v50 }
 0x1a0   :  { %v592_v52 = vpop.eup %591  ;;  %v420_v53 = vmul.f32 1.442695, %v401_v51 }
 0x1a1   :  { %v594_v54 = vpop.eup %593  ;;  %v525_v55 = vld [vmem:[#allocation2] sm:$0xff]  ;;  %v448_v56 = vadd.f32 1.0, %v592_v52 }
 0x1a2   :  { %526 = vst [vmem:[%s897_s4] sm:$0xff] %v525_v55  ;;  %595 = vpow2.f32 %v420_v53 }
 0x1a3   :  { %597 = vrcp.f32 %v448_v56  ;;  %v347_v57 = vpop.xlane.xlu2 %346 }
 0x1a4   :  { %v386_v58 = vadd.f32 %v867_v25, %v347_v57 }
 0x1a6   :  { %v402_v59 = vsub.f32 0.0, %v386_v58 }
 0x1a8   :  { %v596_v60 = vpop.eup %595  ;;  %v422_v61 = vmul.f32 1.442695, %v402_v59 }
 0x1a9   :  { %v598_v62 = vpop.eup %597  ;;  %v449_v63 = vadd.f32 1.0, %v596_v60 }
 0x1aa   :  { %599 = vpow2.f32 %v422_v61 }
 0x1ab   :  { %601 = vrcp.f32 %v449_v63  ;;  %v350_v0 = vpop.xlane.xlu2 %349 }
 0x1ac   :  { %v387_v1 = vadd.f32 %v867_v25, %v350_v0 }
 0x1ae   :  { %v403_v2 = vsub.f32 0.0, %v387_v1 }
 0x1b0   :  { %v600_v3 = vpop.eup %599  ;;  %v424_v4 = vmul.f32 1.442695, %v403_v2 }
 0x1b1   :  { %v602_v5 = vpop.eup %601  ;;  %v450_v6 = vadd.f32 1.0, %v600_v3 }
 0x1b2   :  { %603 = vpow2.f32 %v424_v4 }
 0x1b3   :  { %605 = vrcp.f32 %v450_v6  ;;  %v353_v7 = vpop.xlane.xlu0 %352 }
 0x1b4   :  { %v388_v8 = vadd.f32 %v867_v25, %v353_v7 }
 0x1b6   :  { %v404_v9 = vsub.f32 0.0, %v388_v8 }
 0x1b8   :  { %v604_v10 = vpop.eup %603  ;;  %v426_v11 = vmul.f32 1.442695, %v404_v9 }
 0x1b9   :  { %v606_v12 = vpop.eup %605  ;;  %v451_v14 = vadd.f32 1.0, %v604_v10 }
 0x1ba   :  { %607 = vpow2.f32 %v426_v11 }
 0x1bb   :  { %609 = vrcp.f32 %v451_v14  ;;  %v356_v15 = vpop.xlane.xlu1 %355 }
 0x1bc   :  { %v389_v17 = vadd.f32 %v867_v25, %v356_v15 }
 0x1be   :  { %v405_v18 = vsub.f32 0.0, %v389_v17 }
 0x1c0   :  { %v608_v19 = vpop.eup %607  ;;  %v428_v20 = vmul.f32 1.442695, %v405_v18 }
 0x1c1   :  { %v610_v21 = vpop.eup %609  ;;  %v452_v22 = vadd.f32 1.0, %v608_v19 }
 0x1c2   :  { %611 = vpow2.f32 %v428_v20 }
 0x1c3   :  { %613 = vrcp.f32 %v452_v22 }
 0x1c8   :  { %v612_v23 = vpop.eup %611 }
 0x1c9   :  { %v614_v24 = vpop.eup %613  ;;  %v453_v26 = vadd.f32 1.0, %v612_v23  ;;  %v359_v27 = vpop.xlane.xlu2 %358 }
 0x1ca   :  { %v390_v28 = vadd.f32 %v867_v25, %v359_v27 }
 0x1cb   :  { %615 = vrcp.f32 %v453_v26 }
 0x1cc   :  { %v406_v29 = vsub.f32 0.0, %v390_v28 }
 0x1ce   :  { %v430_v30 = vmul.f32 1.442695, %v406_v29 }
 0x1d0   :  { %617 = vpow2.f32 %v430_v30 }
 0x1d1   :  { %v616_v31 = vpop.eup %615  ;;  %v362_v32 = vpop.xlane.xlu0 %361 }
 0x1d2   :  { %v391_v33 = vadd.f32 %v867_v25, %v362_v32 }
 0x1d4   :  { %v407_v34 = vsub.f32 0.0, %v391_v33 }
 0x1d6   :  { %v618_v35 = vpop.eup %617  ;;  %v432_v36 = vmul.f32 1.442695, %v407_v34 }
 0x1d7   :  { %v454_v37 = vadd.f32 1.0, %v618_v35 }
 0x1d8   :  { %619 = vpow2.f32 %v432_v36 }
 0x1d9   :  { %621 = vrcp.f32 %v454_v37  ;;  %v365_v38 = vpop.xlane.xlu1 %364 }
 0x1da   :  { %v392_v39 = vadd.f32 %v867_v25, %v365_v38 }
 0x1dc   :  { %v408_v40 = vsub.f32 0.0, %v392_v39 }
 0x1de   :  { %v620_v41 = vpop.eup %619  ;;  %v434_v42 = vmul.f32 1.442695, %v408_v40 }
 0x1df   :  { %v622_v43 = vpop.eup %621  ;;  %v455_v44 = vadd.f32 1.0, %v620_v41 }
 0x1e0   :  { %623 = vpow2.f32 %v434_v42 }
 0x1e1   :  { %625 = vrcp.f32 %v455_v44  ;;  %v368_v13 = vpop.xlane.xlu2 %367 }
 0x1e2   :  { %v393_v45 = vadd.f32 %v867_v25, %v368_v13 }
 0x1e4   :  { %v409_v46 = vsub.f32 0.0, %v393_v45 }
 0x1e6   :  { %v624_v47 = vpop.eup %623  ;;  %v436_v48 = vmul.f32 1.442695, %v409_v46 }
 0x1e7   :  { %v626_v16 = vpop.eup %625  ;;  %v456_v49 = vadd.f32 1.0, %v624_v47 }
 0x1e8   :  { %627 = vpow2.f32 %v436_v48 }
 0x1e9   :  { %629 = vrcp.f32 %v456_v49  ;;  %v371_v50 = vpop.xlane.xlu0 %370 }
 0x1ea   :  { %v394_v51 = vadd.f32 %v867_v25, %v371_v50 }
 0x1ec   :  { %v410_v52 = vsub.f32 0.0, %v394_v51 }
 0x1ee   :  { %v628_v53 = vpop.eup %627  ;;  %v438_v54 = vmul.f32 1.442695, %v410_v52 }
 0x1ef   :  { %v630_v55 = vpop.eup %629  ;;  %v457_v56 = vadd.f32 1.0, %v628_v53 }
 0x1f0   :  { %631 = vpow2.f32 %v438_v54 }
 0x1f1   :  { %633 = vrcp.f32 %v457_v56  ;;  %v374_v57 = vpop.xlane.xlu1 %373 }
 0x1f2   :  { %v395_v58 = vadd.f32 %v867_v25, %v374_v57 }
 0x1f4   :  { %v411_v59 = vsub.f32 0.0, %v395_v58 }
 0x1f6   :  { %v632_v60 = vpop.eup %631  ;;  %v440_v61 = vmul.f32 1.442695, %v411_v59 }
 0x1f7   :  { %v634_v62 = vpop.eup %633  ;;  %v458_v63 = vadd.f32 1.0, %v632_v60 }
 0x1f8   :  { %635 = vpow2.f32 %v440_v61 }
 0x1f9   :  { %637 = vrcp.f32 %v458_v63  ;;  %v377_v0 = vpop.xlane.xlu2 %376 }
 0x1fa   :  { %v396_v1 = vadd.f32 %v867_v25, %v377_v0 }
 0x1fc   :  { %v412_v2 = vsub.f32 0.0, %v396_v1 }
 0x1fe   :  { %v636_v3 = vpop.eup %635  ;;  %v442_v4 = vmul.f32 1.442695, %v412_v2 }
 0x1ff   :  { %v638_v5 = vpop.eup %637  ;;  %v459_v6 = vadd.f32 1.0, %v636_v3 }
 0x200   :  { %639 = vpow2.f32 %v442_v4 }
 0x201   :  { %641 = vrcp.f32 %v459_v6  ;;  %v380_v7 = vpop.xlane.xlu0 %379 }
 0x202   :  { %v397_v8 = vadd.f32 %v867_v25, %v380_v7 }
 0x204   :  { %v413_v9 = vsub.f32 0.0, %v397_v8 }
 0x206   :  { %v640_v10 = vpop.eup %639  ;;  %v444_v11 = vmul.f32 1.442695, %v413_v9 }
 0x207   :  { %v642_v12 = vpop.eup %641  ;;  %v460_v14 = vadd.f32 1.0, %v640_v10 }
 0x208   :  { %643 = vpow2.f32 %v444_v11 }
 0x209   :  { %645 = vrcp.f32 %v460_v14 }
 0x20e   :  { %v644_v15 = vpop.eup %643 }
 0x20f   :  { %v646_v17 = vpop.eup %645  ;;  %v461_v18 = vadd.f32 1.0, %v644_v15 }
 0x211   :  { %647 = vrcp.f32 %v461_v18 }
 0x217   :  { %v648_v19 = vpop.eup %647 }

</bundles_post_ra>
